<compile_context>
chip_gen: v6e
topology: v6e:2x2x1
jax: 0.10.0
libtpu: 0.0.40
codegen_flags: <defaults>
</compile_context>

<pallas_src>
import functools

import jax
import jax.numpy as jnp
from jax.experimental import pallas as pl
from jax.experimental.pallas import tpu as pltpu

EPS = 1e-5
_VMEM_LIMIT_BYTES = 56 * 1024 * 1024    # explicit scoped-VMEM limit (< v7x 64 MiB)
_VMEM_BUDGET_BYTES = 44 * 1024 * 1024   # target for tile-size capping (headroom)


# ----------------------------------------------------------------------------
# Helpers
# ----------------------------------------------------------------------------
def _round_up(x, m):
    return (x + m - 1) // m * m


def _largest_tile(total, cap, unit):
    """Largest multiple-of-`unit` divisor of `total` that is <= cap (>= unit)."""
    cap = max(unit, min(cap, total))
    for cand in range(cap - cap % unit, unit - 1, -unit):
        if total % cand == 0:
            return cand
    return unit


def _has_bf16_vpu():
    """v6e / v7x VALUs process bf16 natively; v5e and older do not."""
    try:
        kind = jax.devices()[0].device_kind.lower()
    except Exception:
        return False
    return not any(tag in kind for tag in ("v2", "v3", "v4", "v5"))


# ----------------------------------------------------------------------------
# Kernel 1: conv-matmul + bias + ReLU + Dropout2d mask + BN partial statistics
#   Channel-major: computes a (O, tile_rows) block per grid step.
# ----------------------------------------------------------------------------
def _conv_fused_kernel(p_ref, w_ref, b_ref, m_ref, y_ref, s_ref, ss_ref, *,
                       relu_enable, dropout_enable, bf16_elementwise,
                       rows_per_image, tile_rows, tiles_per_chunk, need_row_mask):
    c = pl.program_id(1)
    t = pl.program_id(2)

    # MXU: (O, K_pad) bf16 @ (K_pad, tm) bf16 -> (O, tm) with f32 accumulation.
    y = jnp.dot(w_ref[...], p_ref[...], preferred_element_type=jnp.float32)

    # Post-MXU elementwise chain; bf16 on chips with a bf16 VPU (v6e/v7x).
    cdt = jnp.bfloat16 if bf16_elementwise else jnp.float32
    y = y.astype(cdt) + b_ref[...].astype(cdt)           # (O, 1) bias, lane-broadcast
    if relu_enable:
        y = jnp.maximum(y, 0.0)
    if dropout_enable:
        y = y * m_ref[...].astype(cdt)                   # per-image (O, 1) channel mask
    yb = y.astype(jnp.bfloat16)
    y_ref[...] = yb                                      # lane-dense bf16 store

    # BN partial statistics on the (otherwise idle) MXU: reduce over rows with
    # a ones / validity column so padded rows never enter the sums.
    if need_row_mask:
        base = (c * tiles_per_chunk + t) * tile_rows
        rid = base + jax.lax.broadcasted_iota(jnp.int32, (tile_rows, 1), 0)
        ones_col = (rid < rows_per_image).astype(jnp.bfloat16)
    else:
        ones_col = jnp.ones((tile_rows, 1), jnp.bfloat16)

    @pl.when(t == 0)
    def _():
        s_ref[...] = jnp.zeros_like(s_ref)
        ss_ref[...] = jnp.zeros_like(ss_ref)

    # TODO(synk): E[y^2]-E[y]^2 can cancel for large-mean channels; a shifted
    # (bias-subtracted) sumsq accumulation would be numerically safer.
    s_ref[...] += jnp.dot(yb, ones_col, preferred_element_type=jnp.float32)
    ss_ref[...] += jnp.dot(yb * yb, ones_col, preferred_element_type=jnp.float32)


# ----------------------------------------------------------------------------
# Kernel 2: apply BatchNorm normalization (per-channel affine), bf16 -> f32
#   Channel-major in and out, so no output transpose is ever materialized.
# ----------------------------------------------------------------------------
def _bn_apply_kernel(y_ref, scale_ref, shift_ref, o_ref):
    y = y_ref[...].astype(jnp.float32)                   # keep mem-bound pass in f32
    o_ref[...] = y * scale_ref[...] + shift_ref[...]


# ----------------------------------------------------------------------------
# Wrapper
# ----------------------------------------------------------------------------
def phm_block_forward(x_nchw, weight, bias, gamma, beta, chan_mask, *,
                      stride, padding, relu_enable=True, dropout_enable=True):
    """Training-mode forward of phmBlock.

    x_nchw:    (N, Cin, H, W)   float32
    weight:    (O, Cin, KH, KW) float32   (PyTorch OIHW)
    bias:      (O,)             float32
    gamma:     (O,) beta: (O,)  float32   BatchNorm2d affine parameters
    chan_mask: (N, O)           float32   Dropout2d mask, already scaled by 1/(1-p)
    Returns:   (N, O, OH, OW)   float32
    """
    N, Cin, H, W = x_nchw.shape
    O, _, KH, KW = weight.shape
    OH = (H + 2 * padding - KH) // stride + 1
    OW = (W + 2 * padding - KW) // stride + 1
    MI = OH * OW                      # conv output rows per image
    M = N * MI                        # total rows (BN population size)
    K = KH * KW * Cin
    K_pad = _round_up(K, 128)         # lane-dense contraction dim for the MXU

    # ---- row-tile selection (multiple of 128 lanes, VMEM-budget capped) -----
    tm = min(512, _round_up(MI, 128))
    while tm > 128 and (2 * (tm * K_pad * 2 + O * tm * 2)
                        + 2 * O * K_pad * 2) > _VMEM_BUDGET_BYTES:
        tm -= 128
    MI_pad = _round_up(MI, tm)
    T = MI_pad // tm
    # Extra "parallel" chunk axis so v7x's 2 TensorCores get work at N == 1.
    CH = 2 if (N == 1 and T >= 2 and T % 2 == 0) else 1
    T2 = T // CH

    # ---- glue: bf16 im2col in channel-major (K, rows) layout ----------------
    # TODO(synk): this still materialises the KH*KW-fold duplicated patch
    # stream in HBM; an in-kernel halo-DMA im2col would remove it.
    x = jnp.transpose(x_nchw, (0, 2, 3, 1)).astype(jnp.bfloat16)   # (N, H, W, Cin)
    xp = jnp.pad(x, ((0, 0), (padding, padding), (padding, padding), (0, 0)))
    cols = []
    for kh in range(KH):
        for kw in range(KW):
            cols.append(xp[:, kh:kh + (OH - 1) * stride + 1:stride,
                           kw:kw + (OW - 1) * stride + 1:stride, :])
    stacked = jnp.stack(cols, axis=1)                     # (N, KH*KW, OH, OW, Cin)
    patches = jnp.transpose(stacked, (0, 1, 4, 2, 3)).reshape(N, K, MI)
    patches = jnp.pad(patches, ((0, 0), (0, K_pad - K), (0, MI_pad - MI)))

    # weight OIHW -> (O, KH, KW, Cin) -> (O, K) -> zero-pad K -> bf16
    w_mat = jnp.transpose(weight, (0, 2, 3, 1)).reshape(O, K)
    w_mat = jnp.pad(w_mat, ((0, 0), (0, K_pad - K))).astype(jnp.bfloat16)
    b_col = bias.astype(jnp.float32).reshape(O, 1)
    mask = chan_mask.astype(jnp.float32).reshape(N, O, 1)

    kernel1 = functools.partial(
        _conv_fused_kernel,
        relu_enable=relu_enable, dropout_enable=dropout_enable,
        bf16_elementwise=_has_bf16_vpu(),
        rows_per_image=MI, tile_rows=tm, tiles_per_chunk=T2,
        need_row_mask=(MI_pad != MI))

    # TODO(synk): the resident weight/bias/mask inputs could use
    # pipeline_mode=pl.Buffered(1) to drop their second pipeline buffer.
    y_bf16, s_part, ss_part = pl.pallas_call(
        kernel1,
        out_shape=(
            jax.ShapeDtypeStruct((N, O, MI_pad), jnp.bfloat16),
            jax.ShapeDtypeStruct((N, CH, O, 1), jnp.float32),
            jax.ShapeDtypeStruct((N, CH, O, 1), jnp.float32),
        ),
        grid=(N, CH, T2),
        in_specs=[
            pl.BlockSpec((None, K_pad, tm), lambda n, c, t: (n, 0, c * T2 + t)),  # patches
            pl.BlockSpec((O, K_pad), lambda n, c, t: (0, 0)),                     # weights (resident)
            pl.BlockSpec((O, 1), lambda n, c, t: (0, 0)),                         # bias column
            pl.BlockSpec((None, O, 1), lambda n, c, t: (n, 0, 0)),                # dropout mask / image
        ],
        out_specs=(
            pl.BlockSpec((None, O, tm), lambda n, c, t: (n, 0, c * T2 + t)),      # bf16 intermediate
            pl.BlockSpec((None, None, O, 1), lambda n, c, t: (n, c, 0, 0)),       # partial sum
            pl.BlockSpec((None, None, O, 1), lambda n, c, t: (n, c, 0, 0)),       # partial sumsq
        ),
        compiler_params=pltpu.CompilerParams(
            dimension_semantics=("parallel", "parallel", "arbitrary"),
            vmem_limit_bytes=_VMEM_LIMIT_BYTES),
    )(patches, w_mat, b_col, mask)

    # ---- tiny per-channel BN math (f32, O elements) -------------------------
    ch_sum = jnp.sum(s_part, axis=(0, 1)).reshape(O)
    ch_sumsq = jnp.sum(ss_part, axis=(0, 1)).reshape(O)
    mean = ch_sum / M
    var = ch_sumsq / M - mean * mean            # biased variance (training BN)
    inv_std = jax.lax.rsqrt(var + EPS)
    scale = (gamma * inv_std).reshape(O, 1).astype(jnp.float32)
    shift = (beta - mean * gamma * inv_std).reshape(O, 1).astype(jnp.float32)

    # ---- kernel 2: BN apply (channel-major, lane-dense, no transpose) -------
    tm_bn = _largest_tile(
        MI_pad, min(2048, max(128, _VMEM_BUDGET_BYTES // (12 * O))), 128)
    out_pad = pl.pallas_call(
        _bn_apply_kernel,
        out_shape=jax.ShapeDtypeStruct((N, O, MI_pad), jnp.float32),
        grid=(N, MI_pad // tm_bn),
        in_specs=[
            pl.BlockSpec((None, O, tm_bn), lambda n, j: (n, 0, j)),
            pl.BlockSpec((O, 1), lambda n, j: (0, 0)),
            pl.BlockSpec((O, 1), lambda n, j: (0, 0)),
        ],
        out_specs=pl.BlockSpec((None, O, tm_bn), lambda n, j: (n, 0, j)),
        compiler_params=pltpu.CompilerParams(
            dimension_semantics=("parallel", "parallel"),
            vmem_limit_bytes=_VMEM_LIMIT_BYTES),
    )(y_bf16, scale, shift)

    # channel-major layout: the result is already NCHW after a free reshape.
    return out_pad[:, :, :MI].reshape(N, O, OH, OW)


# ----------------------------------------------------------------------------
# Pure-JAX f32 reference (silent sanity check)
# ----------------------------------------------------------------------------
def phm_block_reference(x, weight, bias, gamma, beta, chan_mask, *,
                        stride, padding, relu_enable, dropout_enable):
    y = jax.lax.conv_general_dilated(
        x, weight, window_strides=(stride, stride),
        padding=[(padding, padding), (padding, padding)],
        dimension_numbers=("NCHW", "OIHW", "NCHW"))
    y = y + bias[None, :, None, None]
    if relu_enable:
        y = jnp.maximum(y, 0.0)
    if dropout_enable:
        y = y * chan_mask[:, :, None, None]
    mean = jnp.mean(y, axis=(0, 2, 3))
    var = jnp.var(y, axis=(0, 2, 3))
    y = (y - mean[None, :, None, None]) / jnp.sqrt(var[None, :, None, None] + EPS)
    return y * gamma[None, :, None, None] + beta[None, :, None, None]


if __name__ == "__main__":
    # phmBlock(in_channels=4, out_channels=8, kernel_size=3, stride=1,
    #          padding=1, zero_probability=0.25)
    N, Cin, H, W = 2, 4, 16, 16
    Cout, KH, KW = 8, 3, 3
    stride, padding = 1, 1
    zero_probability = 0.25
    relu_enable, dropout_enable = True, True

    key = jax.random.PRNGKey(0)
    kx, kw, kb, km = jax.random.split(key, 4)

    x = jax.random.normal(kx, (N, Cin, H, W), dtype=jnp.float32)
    weight = jax.random.normal(kw, (Cout, Cin, KH, KW), dtype=jnp.float32) * 0.1
    bias = jax.random.normal(kb, (Cout,), dtype=jnp.float32) * 0.1
    gamma = jnp.ones((Cout,), dtype=jnp.float32)    # nn.BatchNorm2d default init
    beta = jnp.zeros((Cout,), dtype=jnp.float32)

    # Dropout2d: zero whole (image, channel) planes with prob p, scale kept ones.
    # TODO(synk): PyTorch's exact RNG stream is not reproducible; the mask is
    # drawn deterministically from a JAX PRNG with identical semantics.
    keep = jax.random.bernoulli(km, 1.0 - zero_probability, (N, Cout))
    chan_mask = keep.astype(jnp.float32) / (1.0 - zero_probability)

    out = phm_block_forward(x, weight, bias, gamma, beta, chan_mask,
                            stride=stride, padding=padding,
                            relu_enable=relu_enable,
                            dropout_enable=dropout_enable)
    out = jax.block_until_ready(out)

    ref = phm_block_reference(x, weight, bias, gamma, beta, chan_mask,
                              stride=stride, padding=padding,
                              relu_enable=relu_enable,
                              dropout_enable=dropout_enable)
    assert out.shape == (N, Cout, H, W)
    # Tolerance reflects the bf16 MXU inputs, bf16 intermediate and bf16 BN
    # statistics vs. a pure-f32 reference.
    assert jnp.allclose(out, ref, rtol=5e-2, atol=5e-2), \
        float(jnp.max(jnp.abs(out - ref)))

    print("KERNEL_OK")
</pallas_src>

<mosaic_0001>
module attributes {stable_mosaic.version = 11 : i64} {
  func.func @_conv_fused_kernel(%arg0: i32, %arg1: i32, %arg2: i32, %arg3: memref<1x128x256xbf16, #tpu.memory_space<vmem>>, %arg4: memref<8x128xbf16, #tpu.memory_space<vmem>>, %arg5: memref<8x1xf32, #tpu.memory_space<vmem>>, %arg6: memref<1x8x1xf32, #tpu.memory_space<vmem>>, %arg7: memref<1x8x256xbf16, #tpu.memory_space<vmem>>, %arg8: memref<1x1x8x1xf32, #tpu.memory_space<vmem>>, %arg9: memref<1x1x8x1xf32, #tpu.memory_space<vmem>>) attributes {dimension_semantics = [#tpu.dimension_semantics<parallel>, #tpu.dimension_semantics<parallel>, #tpu.dimension_semantics<arbitrary>], iteration_bounds = array<i64: 2, 1, 1>, scalar_prefetch = 0 : i64, scratch_operands = 0 : i64, tpu.core_type = #tpu.core_type<tc>, window_params = [{transform_indices = @transform_0, window_bounds = array<i64: 1, 128, 256>}, {pipeline_mode = #tpu.pipeline_mode<synchronous>, transform_indices = @transform_1, window_bounds = array<i64: 8, 128>}, {pipeline_mode = #tpu.pipeline_mode<synchronous>, transform_indices = @transform_2, window_bounds = array<i64: 8, 1>}, {transform_indices = @transform_3, window_bounds = array<i64: 1, 8, 1>}, {transform_indices = @transform_4, window_bounds = array<i64: 1, 8, 256>}, {transform_indices = @transform_5, window_bounds = array<i64: 1, 1, 8, 1>}, {transform_indices = @transform_6, window_bounds = array<i64: 1, 1, 8, 1>}]} {
    %c0 = arith.constant 0 : index
    %c0_0 = arith.constant 0 : index
    %0 = vector.load %arg4[%c0, %c0_0] : memref<8x128xbf16, #tpu.memory_space<vmem>>, vector<8x128xbf16>
    %c0_1 = arith.constant 0 : index
    %c0_2 = arith.constant 0 : index
    %c0_3 = arith.constant 0 : index
    %1 = vector.load %arg3[%c0_1, %c0_2, %c0_3] : memref<1x128x256xbf16, #tpu.memory_space<vmem>>, vector<1x128x256xbf16>
    %2 = vector.shape_cast %1 : vector<1x128x256xbf16> to vector<128x256xbf16>
    %cst = arith.constant dense<0.000000e+00> : vector<8x256xf32>
    %3 = tpu.matmul %0, %2, %cst {dimension_numbers = #tpu.dot_dimension_numbers<[1], [0], [0], [1], [0, 0, 1, 1], [], []>} : vector<8x128xbf16>, vector<128x256xbf16>, vector<8x256xf32> -> vector<8x256xf32>
    %4 = arith.truncf %3 : vector<8x256xf32> to vector<8x256xbf16>
    %c0_4 = arith.constant 0 : index
    %c0_5 = arith.constant 0 : index
    %5 = vector.load %arg5[%c0_4, %c0_5] : memref<8x1xf32, #tpu.memory_space<vmem>>, vector<8x1xf32>
    %6 = arith.truncf %5 : vector<8x1xf32> to vector<8x1xbf16>
    %7 = vector.broadcast %6 : vector<8x1xbf16> to vector<8x256xbf16>
    %8 = arith.addf %4, %7 : vector<8x256xbf16>
    %cst_6 = arith.constant 0.000000e+00 : bf16
    %9 = vector.broadcast %cst_6 : bf16 to vector<8x256xbf16>
    %10 = arith.maximumf %8, %9 : vector<8x256xbf16>
    %c0_7 = arith.constant 0 : index
    %c0_8 = arith.constant 0 : index
    %c0_9 = arith.constant 0 : index
    %11 = vector.load %arg6[%c0_7, %c0_8, %c0_9] : memref<1x8x1xf32, #tpu.memory_space<vmem>>, vector<1x8x1xf32>
    %12 = vector.shape_cast %11 : vector<1x8x1xf32> to vector<8x1xf32>
    %13 = arith.truncf %12 : vector<8x1xf32> to vector<8x1xbf16>
    %14 = vector.broadcast %13 : vector<8x1xbf16> to vector<8x256xbf16>
    %15 = arith.mulf %10, %14 : vector<8x256xbf16>
    %c0_10 = arith.constant 0 : index
    %c0_11 = arith.constant 0 : index
    %c0_12 = arith.constant 0 : index
    %16 = vector.load %arg7[%c0_10, %c0_11, %c0_12] : memref<1x8x256xbf16, #tpu.memory_space<vmem>>, vector<1x8x256xbf16>
    %17 = vector.shape_cast %16 : vector<1x8x256xbf16> to vector<8x256xbf16>
    %18 = vector.shape_cast %15 : vector<8x256xbf16> to vector<1x8x256xbf16>
    tpu.vector_store %arg7[%c0_10, %c0_11, %c0_12], %18 {strides = array<i32>} : memref<1x8x256xbf16, #tpu.memory_space<vmem>>, vector<1x8x256xbf16>,
    %cst_13 = arith.constant 1.000000e+00 : bf16
    %19 = vector.broadcast %cst_13 : bf16 to vector<256x1xbf16>
    %c0_i32 = arith.constant 0 : i32
    %20 = arith.cmpi eq, %arg2, %c0_i32 : i32
    %21 = arith.extui %20 : i1 to i32
    %c0_i32_14 = arith.constant 0 : i32
    %22 = arith.cmpi ne, %21, %c0_i32_14 : i32
    scf.if %22 {
      %cst_33 = arith.constant 0.000000e+00 : f32
      %38 = vector.broadcast %cst_33 : f32 to vector<8x1xf32>
      %c0_34 = arith.constant 0 : index
      %c0_35 = arith.constant 0 : index
      %c0_36 = arith.constant 0 : index
      %c0_37 = arith.constant 0 : index
      %39 = vector.load %arg8[%c0_34, %c0_35, %c0_36, %c0_37] : memref<1x1x8x1xf32, #tpu.memory_space<vmem>>, vector<1x1x8x1xf32>
      %40 = vector.shape_cast %39 : vector<1x1x8x1xf32> to vector<8x1xf32>
      %41 = vector.shape_cast %38 : vector<8x1xf32> to vector<1x1x8x1xf32>
      tpu.vector_store %arg8[%c0_34, %c0_35, %c0_36, %c0_37], %41 {strides = array<i32>} : memref<1x1x8x1xf32, #tpu.memory_space<vmem>>, vector<1x1x8x1xf32>,
      %cst_38 = arith.constant 0.000000e+00 : f32
      %42 = vector.broadcast %cst_38 : f32 to vector<8x1xf32>
      %c0_39 = arith.constant 0 : index
      %c0_40 = arith.constant 0 : index
      %c0_41 = arith.constant 0 : index
      %c0_42 = arith.constant 0 : index
      %43 = vector.load %arg9[%c0_39, %c0_40, %c0_41, %c0_42] : memref<1x1x8x1xf32, #tpu.memory_space<vmem>>, vector<1x1x8x1xf32>
      %44 = vector.shape_cast %43 : vector<1x1x8x1xf32> to vector<8x1xf32>
      %45 = vector.shape_cast %42 : vector<8x1xf32> to vector<1x1x8x1xf32>
      tpu.vector_store %arg9[%c0_39, %c0_40, %c0_41, %c0_42], %45 {strides = array<i32>} : memref<1x1x8x1xf32, #tpu.memory_space<vmem>>, vector<1x1x8x1xf32>,
    } else {
    }
    %c0_15 = arith.constant 0 : index
    %c0_16 = arith.constant 0 : index
    %c0_17 = arith.constant 0 : index
    %c0_18 = arith.constant 0 : index
    %23 = vector.load %arg8[%c0_15, %c0_16, %c0_17, %c0_18] : memref<1x1x8x1xf32, #tpu.memory_space<vmem>>, vector<1x1x8x1xf32>
    %24 = vector.shape_cast %23 : vector<1x1x8x1xf32> to vector<8x1xf32>
    %cst_19 = arith.constant dense<0.000000e+00> : vector<8x1xf32>
    %25 = tpu.matmul %15, %19, %cst_19 {dimension_numbers = #tpu.dot_dimension_numbers<[1], [0], [0], [1], [0, 0, 1, 1], [], []>} : vector<8x256xbf16>, vector<256x1xbf16>, vector<8x1xf32> -> vector<8x1xf32>
    %26 = arith.addf %24, %25 : vector<8x1xf32>
    %c0_20 = arith.constant 0 : index
    %c0_21 = arith.constant 0 : index
    %c0_22 = arith.constant 0 : index
    %c0_23 = arith.constant 0 : index
    %27 = vector.load %arg8[%c0_20, %c0_21, %c0_22, %c0_23] : memref<1x1x8x1xf32, #tpu.memory_space<vmem>>, vector<1x1x8x1xf32>
    %28 = vector.shape_cast %27 : vector<1x1x8x1xf32> to vector<8x1xf32>
    %29 = vector.shape_cast %26 : vector<8x1xf32> to vector<1x1x8x1xf32>
    tpu.vector_store %arg8[%c0_20, %c0_21, %c0_22, %c0_23], %29 {strides = array<i32>} : memref<1x1x8x1xf32, #tpu.memory_space<vmem>>, vector<1x1x8x1xf32>,
    %c0_24 = arith.constant 0 : index
    %c0_25 = arith.constant 0 : index
    %c0_26 = arith.constant 0 : index
    %c0_27 = arith.constant 0 : index
    %30 = vector.load %arg9[%c0_24, %c0_25, %c0_26, %c0_27] : memref<1x1x8x1xf32, #tpu.memory_space<vmem>>, vector<1x1x8x1xf32>
    %31 = vector.shape_cast %30 : vector<1x1x8x1xf32> to vector<8x1xf32>
    %32 = arith.mulf %15, %15 : vector<8x256xbf16>
    %cst_28 = arith.constant dense<0.000000e+00> : vector<8x1xf32>
    %33 = tpu.matmul %32, %19, %cst_28 {dimension_numbers = #tpu.dot_dimension_numbers<[1], [0], [0], [1], [0, 0, 1, 1], [], []>} : vector<8x256xbf16>, vector<256x1xbf16>, vector<8x1xf32> -> vector<8x1xf32>
    %34 = arith.addf %31, %33 : vector<8x1xf32>
    %c0_29 = arith.constant 0 : index
    %c0_30 = arith.constant 0 : index
    %c0_31 = arith.constant 0 : index
    %c0_32 = arith.constant 0 : index
    %35 = vector.load %arg9[%c0_29, %c0_30, %c0_31, %c0_32] : memref<1x1x8x1xf32, #tpu.memory_space<vmem>>, vector<1x1x8x1xf32>
    %36 = vector.shape_cast %35 : vector<1x1x8x1xf32> to vector<8x1xf32>
    %37 = vector.shape_cast %34 : vector<8x1xf32> to vector<1x1x8x1xf32>
    tpu.vector_store %arg9[%c0_29, %c0_30, %c0_31, %c0_32], %37 {strides = array<i32>} : memref<1x1x8x1xf32, #tpu.memory_space<vmem>>, vector<1x1x8x1xf32>,
    return
  }
  func.func @transform_0(%arg0: i32, %arg1: i32, %arg2: i32) -> (i32, i32, i32) {
    %c1_i32 = arith.constant 1 : i32
    %0 = arith.muli %arg1, %c1_i32 : i32
    %1 = arith.addi %0, %arg2 : i32
    %c0_i32 = arith.constant 0 : i32
    %c0_i32_0 = arith.constant 0 : i32
    return %arg0, %c0_i32, %1 : i32, i32, i32
  }
  func.func @transform_1(%arg0: i32, %arg1: i32, %arg2: i32) -> (i32, i32) {
    %c0_i32 = arith.constant 0 : i32
    %c0_i32_0 = arith.constant 0 : i32
    %c0_i32_1 = arith.constant 0 : i32
    return %c0_i32, %c0_i32_0 : i32, i32
  }
  func.func @transform_2(%arg0: i32, %arg1: i32, %arg2: i32) -> (i32, i32) {
    %c0_i32 = arith.constant 0 : i32
    %c0_i32_0 = arith.constant 0 : i32
    %c0_i32_1 = arith.constant 0 : i32
    return %c0_i32, %c0_i32_0 : i32, i32
  }
  func.func @transform_3(%arg0: i32, %arg1: i32, %arg2: i32) -> (i32, i32, i32) {
    %c0_i32 = arith.constant 0 : i32
    %c0_i32_0 = arith.constant 0 : i32
    %c0_i32_1 = arith.constant 0 : i32
    return %arg0, %c0_i32, %c0_i32_0 : i32, i32, i32
  }
  func.func @transform_4(%arg0: i32, %arg1: i32, %arg2: i32) -> (i32, i32, i32) {
    %c1_i32 = arith.constant 1 : i32
    %0 = arith.muli %arg1, %c1_i32 : i32
    %1 = arith.addi %0, %arg2 : i32
    %c0_i32 = arith.constant 0 : i32
    %c0_i32_0 = arith.constant 0 : i32
    return %arg0, %c0_i32, %1 : i32, i32, i32
  }
  func.func @transform_5(%arg0: i32, %arg1: i32, %arg2: i32) -> (i32, i32, i32, i32) {
    %c0_i32 = arith.constant 0 : i32
    %c0_i32_0 = arith.constant 0 : i32
    %c0_i32_1 = arith.constant 0 : i32
    return %arg0, %arg1, %c0_i32, %c0_i32_0 : i32, i32, i32, i32
  }
  func.func @transform_6(%arg0: i32, %arg1: i32, %arg2: i32) -> (i32, i32, i32, i32) {
    %c0_i32 = arith.constant 0 : i32
    %c0_i32_0 = arith.constant 0 : i32
    %c0_i32_1 = arith.constant 0 : i32
    return %arg0, %arg1, %c0_i32, %c0_i32_0 : i32, i32, i32, i32
  }
}

</mosaic_0001>

<bundles_post_ra>
// kernel: tpu_custom_call.1
= control target key start
LH: loop header
LB: loop body
LE: loop exit
PB: predicated region body
PF: predicated region fallthrough
CT: control target
= control target key end

     0   :  { %s1372_s0 = inlined_call_operand.hbm [shape: bf16[2,128,256], index: 0, kind: input, shape index: {}]   ;;  %s1373_s1 = inlined_call_operand.vmem [shape: bf16[8,128], index: 1, kind: input, shape index: {}]   ;;  %s1374_s2 = inlined_call_operand.vmem [shape: f32[8,1], index: 2, kind: input, shape index: {}]   ;;  %s1375_s3 = inlined_call_operand.vmem [shape: f32[2,8,1], index: 3, kind: input, shape index: {}]   ;;  %s1376_s4 = inlined_call_operand.hbm [shape: bf16[2,8,256], index: 4, kind: output, shape index: {0}]   ;;  %s1377_s5 = inlined_call_operand.vmem [shape: f32[2,1,8,1], index: 5, kind: output, shape index: {1}]   ;;  %s1378_s6 = inlined_call_operand.vmem [shape: f32[2,1,8,1], index: 6, kind: output, shape index: {2}]  }
   0x1   :  { %1379 = sst [smem:[#allocation8_spill]] %s1372_s0 }
   0x2   :  { %12 = vsyncpa [#allocation3], 0 }
   0x3   :  { %14 = vsyncpa [#allocation3 + $0x1], 0 }
   0x4   :  { %15 = vsyncpa [#allocation4], 0 }
   0x5   :  { %17 = vsyncpa [#allocation4 + $0x1], 0  ;;  %s1149_s21 = smov 0   ;;  %s1151_s22 = smov 0  }
   0x6   :  { %s1153_s23 = smov 0   ;;  %s1155_s24 = smov 0  }
   0x7   :  { %s1157_s25 = smov 0   ;;  %s1159_s26 = smov 0  }
   0x8 LB: > { %s824_s27 = sadd.s32 4294967295, %s1105_s26   ;;  %s825_s28 = sadd.s32 4294967294, %s1105_s26   ;;  %s1105_s26 = sphi %s1159_s26, %s23_s26   ;;  %s1101_s25 = sphi %s1157_s25, %s1391_s25   ;;  %s1097_s24 = sphi %s1155_s24, %s1390_s24   ;;  %s1093_s23 = sphi %s1153_s23, %s1389_s23   ;;  %s1089_s22 = sphi %s1151_s22, %s1388_s22   ;;  %s1085_s21 = sphi %s1149_s21, %s1387_s21  }
   0x9   : > { %s42_s29 = sadd.s32 1, %s1101_s25  ;;  %s53_s30 = sadd.s32 1, %s1093_s23 }
   0xa   : > { %p44_p0 = scmp.ge.s32.totalorder %s42_s29, 2  ;;  %p60_p1 = scmp.ne.s32.totalorder %s1093_s23, %s1089_s22 }
   0xb   : > { %p61_p2 = scmp.eq.s32.totalorder %s1105_s26, 0  ;;  %p66_p3 = scmp.ne.s32.totalorder %s1089_s22, %s1085_s21 }
   0xc   : > { %s1393_s29 = smov (%p44_p0, %s42_s29), 0  ;;  %p67_p5 = scmp.eq.s32.totalorder %s824_s27, 0 }
   0xd   : > { %p1190_p4 = por %p61_p2, %p60_p1  ;;  %s48_s8 = ssub.s32 %s1101_s25, %s1393_s29 }
   0xe   : > { %p162_p6 = scmp.eq.s32.totalorder %s824_s27, 1  ;;  %p51_p7 = scmp.eq.s32.totalorder %s48_s8, 0 }
   0xf   : > { %p1196_p8 = por %p67_p5, %p66_p3  ;;  %p168_p10 = scmp.eq.s32.totalorder %s825_s28, 1 }
  0x10   : > { %p1200_p9 = por %p162_p6, %p60_p1  ;;  %p917_p13 = scmp.lt.s32.totalorder %s1105_s26, 2 }
  0x11   : > { %s1205_s11 = scalar_select %p51_p7, %s1093_s23, %s53_s30  }
  0x12   : > { %p1207_p11 = por %p168_p10, %p66_p3  ;;  %s250_s13 = sand.u32 1, %s1093_s23  }
  0x13   : > { %s828_s14 = sshll.u32 %s250_s13, 7  ;;  %s859_s15 = sshll.u32 %s1101_s25, 11 }
  0x14   : > { %s1384_s0 = sld [smem:[#allocation8_spill]]  ;;  %s254_s19 = scalar_lea.vmem [#allocation2], %s828_s14 }
  0x15   : > { %s264_s20 = sshll.u32 %s254_s19, 4  ;;  %p1220_p0 = pnand %p917_p13, %p1190_p4  ;;  %s265_s20 = int_to_ptr.vmem [resolvable:$true] %s264_s20 }
  0x16   : > { %p831_p1 = scmp.ge.s32.totalorder %s1105_s26, 1  ;;  %s251_s28 = scalar_lea.sflag [#allocation3], %s250_s13 }
  0x17   : > { %p999_p2 = pneg %p1220_p0  ;;  %s1010_s30 = scalar_lea.vmem %s265_s20, 2048 }
  0x18   : > { %p1011_p3 = scmp.ne.s32.totalorder %s265_s20, %s1010_s30  ;;  %s1107_s8 = smov [#allocation2]  }
  0x19   : > { %s1015_s16 = sshll.u32 %s1107_s8, 4  ;;  %s1016_s16 = int_to_ptr.vmem [resolvable:$false] %s1015_s16 }
  0x1a   : > { %s263_s18 = scalar_lea.hbm %s1384_s0, %s859_s15  ;;  %p1013_p5 = pnand %p1011_p3, %p999_p2 }
  0x1b   : > { %s1017_s14 = scalar_lea.vmem %s1016_s16, 4096  ;;  %p1018_p7 = scmp.lt.s32.totalorder %s265_s20, %s1016_s16 }
  0x1c   : > { %p1014_p6 = pneg %p1013_p5  ;;  %p1019_p10 = scmp.lt.s32.totalorder %s1017_s14, %s1010_s30 }
  0x1e   : > { %p1020_p12 = por %p1019_p10, %p1018_p7 }
  0x20   : > { %p1021_p4 = pnand %p1020_p12, %p1014_p6 }
  0x22   : > { %1024 = shalt.err (!%p1021_p4)
}
  0x23   : > { %s1108_s7 = smov 128   ;;  %s1109_s13 = smov 8  }
  0x24   : > { %912 = dma.hbm_to_vmem [thread:$0]  (!%p1220_p0), %s263_s18, 2048, %s265_s20, %s251_s28, %s1108_s7, %s1108_s7, %s1109_s13  }
  0x25   : > { %p279_p13 = scmp.lt.s32.totalorder %s1105_s26, 3 }
  0x27   : > { %p280_p2 = pnand %p831_p1, %p279_p13 }
  0x28   : > { %s1233_s15 = sand.u32 (!%p280_p2), 1, %s1089_s22  }
  0x29   : > { %283 = sbr.rel (%p280_p2) target bundleno = 487 (0x1e7), region = 36  ;;  %s832_s17 = sshll.u32 (!%p280_p2), %s1233_s15, 7 }
  0x2a   : > { %s286_s19 = scalar_lea.sflag (!%p280_p2), [#allocation3], %s1233_s15  ;;  %s1237_s30 = scalar_lea.vmem (!%p280_p2), [#allocation2], %s832_s17 }
  0x2e   : > { %1076 = dma.done.wait (%p1196_p8), %s286_s19, 2048  }
  0x2f   : > { %1078 = vsyncadd (%p1196_p8), %s286_s19, 4294965248  ;;  %v1110_v0 = vmov 0   ;;  %v1111_v1 = vmov 1065369472   ;;  %p338_p12 = scmp.lt.s32.totalorder %s1097_s24, 1  ;;  %v500_v10 = vld [vmem:[%s1374_s2] sm:$0xff] }
  0x30   : > { %489 = vmatprep.mubr.bf16.mxu0 %v1110_v0  ;;  %972 = vset.pattern.permute.xlu0 %v1110_v0  ;;  %v973_v2 = vld [vmem:[%s1237_s30 + $0x74] ss:$8 sps:$4 sm:$0xff]   ;;  %v975_v3 = vld [vmem:[%s1237_s30 + $0x70] ss:$8 sps:$4 sm:$0xff]   ;;  %v976_v4 = vld [vmem:[%s1237_s30 + $0x64] ss:$8 sps:$4 sm:$0xff]   ;;  %v501_v13 = vpack.c.bf16 %v500_v10, %v500_v10 }
  0x31   : > { %861 = vmatprep.subr.bf16.mxu1 %v1111_v1  ;;  %s339_s9 = scalar_select %p338_p12, %s1097_s24, 1  ;;  %457 = vmatprep.subr.bf16.mxu0 %v973_v2  ;;  %v978_v5 = vld [vmem:[%s1237_s30 + $0x60] ss:$8 sps:$4 sm:$0xff]   ;;  %v979_v6 = vld [vmem:[%s1237_s30 + $0x54] ss:$8 sps:$4 sm:$0xff]   ;;  %vm531_vm0 = vcmask 7168  }
  0x32   : > { %862 = vmatpush3.bf16.msra.mxu1 %v1111_v1  ;;  %458 = vmatpush1.bf16.msra.mxu0 %v975_v3  ;;  %v981_v7 = vld [vmem:[%s1237_s30 + $0x50] ss:$8 sps:$4 sm:$0xff]   ;;  %v982_v8 = vld [vmem:[%s1237_s30 + $0x44] ss:$8 sps:$4 sm:$0xff]   ;;  %v984_v9 = vld [vmem:[%s1237_s30 + $0x40] ss:$8 sps:$4 sm:$0xff]  }
  0x33   : > { %863 = vmatprep.subr.bf16.mxu1 %v1111_v1  ;;  %459 = vmatprep.subr.bf16.mxu0 %v976_v4  ;;  %s1258_s18 = sshll.u32 %s339_s9, 3  ;;  %v985_v12 = vld [vmem:[%s1237_s30 + $0x34] ss:$8 sps:$4 sm:$0xff]   ;;  %v987_v15 = vld [vmem:[%s1237_s30 + $0x30] ss:$8 sps:$4 sm:$0xff]   ;;  %s833_s13 = sshll.u32 %s1233_s15, 3 }
  0x34   : > { %s341_s28 = scalar_lea.vmem %s1375_s3, %s1258_s18  ;;  %504 = vperm.xlu0 %972, %v501_v13   ;;  %v988_v16 = vld [vmem:[%s1237_s30 + $0x24] ss:$8 sps:$4 sm:$0xff]   ;;  %v990_v17 = vld [vmem:[%s1237_s30 + $0x20] ss:$8 sps:$4 sm:$0xff]   ;;  %v991_v18 = vld [vmem:[%s1237_s30 + $0x14] ss:$8 sps:$4 sm:$0xff]   ;;  %s1314_s9 = scalar_lea.vmem %s1377_s5, %s1258_s18 }
  0x35   : > { %v511_v11 = vld [vmem:[%s341_s28] sm:$0xff]  ;;  %v993_v19 = vld [vmem:[%s1237_s30 + $0x10] ss:$8 sps:$4 sm:$0xff]   ;;  %s317_s17 = scalar_lea.vmem [#allocation5], %s833_s13  ;;  %v1112_v40 = vmov 0.0   ;;  %s1322_s28 = scalar_lea.vmem %s1378_s6, %s1258_s18 }
  0x36   : > { %864 = vmatpush3.bf16.msra.mxu1 %v1111_v1  ;;  %460 = vmatpush1.bf16.msra.mxu0 %v978_v5  ;;  %v512_v14 = vpack.c.bf16 %v511_v11, %v511_v11  ;;  %v994_v20 = vld [vmem:[%s1237_s30 + $0x4] ss:$8 sps:$4 sm:$0xff]   ;;  %v996_v21 = vld [vmem:[%s1237_s30] ss:$8 sps:$4 sm:$0xff]   ;;  %532 = vst.msk [vmem:[%s1314_s9] sm:$0xff] %vm531_vm0, %v1112_v40  ;;  %533 = vst.msk [vmem:[%s1322_s28] sm:$0xff] %vm531_vm0, %v1112_v40 }
  0x37   : > { %865 = vmatprep.subr.bf16.mxu1 %v1111_v1  ;;  %461 = vmatprep.subr.bf16.mxu0 %v979_v6  ;;  %v360_v22 = vld [vmem:[%s1373_s1] sm:$0xf]  ;;  %s860_s8 = sshll.u32 %s1097_s24, 7  ;;  %s655_s16 = sshll.u32 %s317_s17, 4  ;;  %s656_s16 = int_to_ptr.vmem [resolvable:$true] %s655_s16 }
  0x38   : > { %515 = vperm.xlu0 %972, %v512_v14   ;;  %s653_s13 = scalar_lea.hbm %s1376_s4, %s860_s8  ;;  %s624_s19 = scalar_lea.sflag [#allocation4], %s1233_s15 }
  0x39   : > { %s1025_s30 = scalar_lea.vmem %s656_s16, 128  ;;  %s1113_s0 = smov [#allocation5]  }
  0x3a   : > { %866 = vmatpush3.bf16.msra.mxu1 %v1111_v1  ;;  %462 = vmatpush1.bf16.msra.mxu0 %v981_v7  ;;  %p1026_p8 = scmp.ne.s32.totalorder %s656_s16, %s1025_s30  ;;  %s1029_s20 = sshll.u32 %s1113_s0, 4  ;;  %s1030_s20 = int_to_ptr.vmem [resolvable:$false] %s1029_s20 }
  0x3b   : > { %867 = vmatprep.subr.bf16.mxu1 %v1111_v1  ;;  %463 = vmatprep.subr.bf16.mxu0 %v982_v8  ;;  %s1031_s18 = scalar_lea.vmem %s1030_s20, 256  ;;  %p1032_p3 = scmp.lt.s32.totalorder %s656_s16, %s1030_s20 }
  0x3c   : > { %p1027_p0 = pnand %p1026_p8, %p1200_p9  ;;  %p1033_p5 = scmp.lt.s32.totalorder %s1031_s18, %s1025_s30 }
  0x3e   : > { %868 = vmatpush3.bf16.msra.mxu1 %v1111_v1  ;;  %464 = vmatpush1.bf16.msra.mxu0 %v984_v9  ;;  %p1028_p1 = pneg %p1027_p0  ;;  %p1034_p6 = por %p1033_p5, %p1032_p3 }
  0x3f   : > { %869 = vmatprep.subr.bf16.mxu1 %v1111_v1  ;;  %465 = vmatprep.subr.bf16.mxu0 %v985_v12 }
  0x40   : > { %p1035_p7 = pnand %p1034_p6, %p1028_p1 }
  0x42   : > { %870 = vmatpush3.bf16.msra.mxu1 %v1111_v1  ;;  %466 = vmatpush1.bf16.msra.mxu0 %v987_v15 }
  0x43   : > { %871 = vmatprep.subr.bf16.mxu1 %v1111_v1  ;;  %467 = vmatprep.subr.bf16.mxu0 %v988_v16 }
  0x46   : > { %872 = vmatpush3.bf16.msra.mxu1 %v1111_v1  ;;  %468 = vmatpush1.bf16.msra.mxu0 %v990_v17 }
  0x47   : > { %873 = vmatprep.subr.bf16.mxu1 %v1111_v1  ;;  %469 = vmatprep.subr.bf16.mxu0 %v991_v18 }
  0x4a   : > { %874 = vmatpush3.bf16.msra.mxu1 %v1111_v1  ;;  %470 = vmatpush1.bf16.msra.mxu0 %v993_v19 }
  0x4b   : > { %875 = vmatprep.subr.bf16.mxu1 %v1111_v1  ;;  %471 = vmatprep.subr.bf16.mxu0 %v994_v20 }
  0x4e   : > { %876 = vmatpush3.bf16.msra.mxu1 %v1111_v1  ;;  %472 = vmatpush1.bf16.msra.mxu0 %v996_v21 }
  0x4f   : > { %883 = vmatprep.subr.bf16.mxu0 %v1111_v1 }
  0x51   : > { %490 = vmatmul.mubr.bf16.vlgmr.msra.gmra.mxu0 %v360_v22 }
  0x52   : > { %884 = vmatpush3.bf16.msra.mxu0 %v1111_v1 }
  0x53   : > { %885 = vmatprep.subr.bf16.mxu0 %v1111_v1 }
  0x56   : > { %886 = vmatpush3.bf16.msra.mxu0 %v1111_v1 }
  0x57   : > { %887 = vmatprep.subr.bf16.mxu0 %v1111_v1 }
  0x5a   : > { %888 = vmatpush3.bf16.msra.mxu0 %v1111_v1 }
  0x5b   : > { %889 = vmatprep.subr.bf16.mxu0 %v1111_v1 }
  0x5e   : > { %890 = vmatpush3.bf16.msra.mxu0 %v1111_v1 }
  0x5f   : > { %891 = vmatprep.subr.bf16.mxu0 %v1111_v1 }
  0x62   : > { %892 = vmatpush3.bf16.msra.mxu0 %v1111_v1 }
  0x63   : > { %893 = vmatprep.subr.bf16.mxu0 %v1111_v1 }
  0x66   : > { %894 = vmatpush3.bf16.msra.mxu0 %v1111_v1 }
  0x67   : > { %895 = vmatprep.subr.bf16.mxu0 %v1111_v1 }
  0x6a   : > { %896 = vmatpush3.bf16.msra.mxu0 %v1111_v1 }
  0x6b   : > { %897 = vmatprep.subr.bf16.mxu0 %v1111_v1 }
  0x6e   : > { %898 = vmatpush3.bf16.msra.mxu0 %v1111_v1 }
  0xaf   : > { %v505_v24 = vpop.permute.xlu0 %504 }
  0xb3   : > { %v516_v33 = vpop.permute.xlu0 %515 }
 0x111   : > { %v491_v23 = vpop.f32.mrf.mxu0 }
 0x112   : > { %v498_v25 = vpack.c.bf16 %v491_v23, %v491_v23 }
 0x113   : > { %v493_v26 = vpop.f32.mrf.mxu0 }
 0x114   : > { %v507_v27 = vadd.bf16 %v505_v24, %v498_v25  ;;  %v499_v28 = vpack.c.bf16 %v493_v26, %v493_v26 }
 0x115   : > { %v495_v29 = vpop.f32.mrf.mxu0 }
 0x116   : > { %v508_v30 = vadd.bf16 %v505_v24, %v499_v28  ;;  %v509_v31 = vmax.bf16 %v1110_v0, %v507_v27 }
 0x117   : > { %v496_v32 = vpop.f32.mrf.mxu0 }
 0x118   : > { %v510_v34 = vmax.bf16 %v1110_v0, %v508_v30  ;;  %v518_v35 = vmul.bf16 %v516_v33, %v509_v31 }
 0x11a   : > { %v519_v36 = vmul.bf16 %v516_v33, %v510_v34  ;;  %v579_v39 = vmul.bf16 %v518_v35, %v518_v35 }
 0x11c   : > { %v853_v37 = vcombine.low %v518_v35, %v519_v36  ;;  %567 = vmatprep.mubr.bf16.mxu1 %v519_v36  ;;  %v580_v38 = vmul.bf16 %v519_v36, %v519_v36 }
 0x11d   : > { %568 = vmatmul.mubr.bf16.vlgmr.msra.gmra.mxu1 %v518_v35 }
 0x11e   : > { %613 = vmatprep.mubr.bf16.mxu0 %v580_v38  ;;  %526 = vst [vmem:[%s317_s17] sm:$0xff] %v853_v37 }
 0x11f   : > { %614 = vmatmul.mubr.bf16.vlgmr.msra.gmra.mxu0 %v579_v39 }
 0x120   : > { %1038 = shalt.err (!%p1035_p7)
}
 0x121   : > { %s1039_s24 = scalar_lea.hbm %s653_s13, 128  ;;  %s1043_s27 = scalar_lea.hbm %s1376_s4, 256 }
 0x122   : > { %p1040_p10 = scmp.ne.s32.totalorder %s653_s13, %s1039_s24  ;;  %p1044_p2 = scmp.lt.s32.totalorder %s653_s13, %s1376_s4 }
 0x123   : > { %p1045_p12 = scmp.lt.s32.totalorder %s1043_s27, %s1039_s24 }
 0x124   : > { %p1041_p4 = pnand %p1040_p10, %p1200_p9 }
 0x125   : > { %p1046_p8 = por %p1045_p12, %p1044_p2 }
 0x126   : > { %p1042_p13 = pneg %p1041_p4 }
 0x128   : > { %p1047_p0 = pnand %p1046_p8, %p1042_p13 }
 0x12a   : > { %1050 = shalt.err (!%p1047_p0)
}
 0x12b   : > { %907 = dma.vmem_to_hbm [thread:$0]  (%p1200_p9), %s656_s16, 128, %s653_s13, %s624_s19   ;;  %v534_v42 = vld [vmem:[%s1314_s9] sm:$0xff] }
 0x12c   : > { %v578_v47 = vld [vmem:[%s1322_s28] sm:$0xff] }
 0x1dd   : > { %v877_v41 = vpop.f32.mrf.mxu1 }
 0x1df   : > { %v878_v43 = vpop.f32.mrf.mxu1  ;;  %v899_v44 = vpop.f32.mrf.mxu0 }
 0x1e0   : > { %v879_v45 = vadd.f32 %v878_v43, %v877_v41 }
 0x1e1   : > { %v880_v46 = vpop.f32.mrf.mxu1  ;;  %v900_v48 = vpop.f32.mrf.mxu0 }
 0x1e2   : > { %v575_v49 = vadd.f32 %v879_v45, %v534_v42  ;;  %v901_v50 = vadd.f32 %v900_v48, %v899_v44 }
 0x1e3   : > { %v881_v51 = vpop.f32.mrf.mxu1  ;;  %v902_v52 = vpop.f32.mrf.mxu0 }
 0x1e4   : > { %577 = vst.msk [vmem:[%s1314_s9] sm:$0xff] %vm531_vm0, %v575_v49  ;;  %v621_v53 = vadd.f32 %v901_v50, %v578_v47 }
 0x1e5   : > { %v903_v54 = vpop.f32.mrf.mxu0 }
 0x1e6   : > { %622 = vst.msk [vmem:[%s1322_s28] sm:$0xff] %vm531_vm0, %v621_v53 }
 0x1e7 PF: > { %s673_s0 = sand.u32 1, %s1085_s21   ;;  %p1386_p9 = scmp.ge.s32.totalorder %s1105_s26, 2 }
 0x1e8   : > { %s674_s10 = scalar_lea.sflag [#allocation4], %s673_s0 }
 0x1e9   : > { %p914_p1 = pnand %p1386_p9, %p1207_p11 }
 0x1eb   : > { %p915_p3 = pneg %p914_p1 }
 0x1ed   : > { %1080 = dma.done.wait (%p915_p3), %s674_s10, 128  }
 0x1ee   : > { %1082 = vsyncadd (%p915_p3), %s674_s10, 4294967168  ;;  %s23_s26 = sadd.s32 1, %s1105_s26   ;;  %s1387_s21 = smov %s1089_s22 }
 0x1ef   : > { %p20_p5 = scmp.ge.s32.totalorder %s23_s26, 4   ;;  %s1388_s22 = smov %s1093_s23 }
 0x1f0   : > { %s1389_s23 = smov %s1205_s11  ;;  %s1390_s24 = smov %s1101_s25 }
 0x1f1   : > { %s1391_s25 = smov %s1393_s29  ;;  %22 = sbr.rel (!%p20_p5) target bundleno = 8 (0x8), region = 112 }
 0x1f6   :  { %699 = vsyncpa [#allocation3], 1 }
 0x1f7   :  { %701 = vsyncpa [#allocation3 + $0x1], 1 }
 0x1f8   :  { %702 = vsyncpa [#allocation4], 1 }
 0x1f9   :  { %704 = vsyncpa [#allocation4 + $0x1], 1 }

</bundles_post_ra>
